<compile_context>
chip_gen: v5e
topology: v5e:2x2
jax: 0.10.0
libtpu: 0.0.40
codegen_flags: <defaults>
</compile_context>

<pallas_src>
import functools

import jax
import jax.numpy as jnp
from jax import lax
from jax.experimental import pallas as pl
from jax.experimental.pallas import tpu as pltpu

_LANE = 128
_MAX_SEQ_TILE = 1024              # raised from 512; VMEM budget still caps it
_MAX_I_CHUNK = 512                # bound on the (tS, I) intermediate width
_VMEM_BUDGET = 32 * 1024 * 1024   # target working set (fits every gen incl. v7x)


def _round_up(x, m):
    return ((x + m - 1) // m) * m


def _similarity2_kernel(enc_ref, h2_ref, w1_ref, w3_ref, b3_ref, out_ref,
                        *, i_chunk, n_chunks, act_dtype):
    """One (batch, seq-tile) grid step.

    enc_ref: (1, tS, E)     input dtype  encoder tile (cast to MXU dtype here)
    h2_ref : (1, 1, I_pad)  f32          fc2(decoder) + b1 + b2 (per batch)
    w1_ref : (E, I_pad)     bf16         fc1 weight, pre-transposed / I-padded
    w3_ref : (1, I_pad)     f32          fc3 weight as a row
    b3_ref : (1,)           f32          fc3 bias (SMEM scalar)
    out_ref: (1, 1, tS)     f32          lane-dense scores
    """
    enc = enc_ref[0].astype(w1_ref.dtype)                      # (tS, E) -> bf16 in-kernel
    t_s = enc.shape[0]

    if n_chunks == 1:
        # fc1 on the MXU (bf16 operands, f32 accumulation).
        h1 = jnp.dot(enc, w1_ref[...], preferred_element_type=jnp.float32)
        t = jnp.tanh((h1 + h2_ref[0]).astype(act_dtype))       # EUP (bf16 on v6e/v7x)
        # fc3 as VPU multiply + lane reduce (f32 accumulation, no N=1 matmul).
        score = jnp.sum(t * w3_ref[...], axis=-1)              # (tS,) f32
    else:
        # Chunk the I dimension to bound the (tS, I) intermediate / vreg pressure.
        def chunk(c, acc):
            i0 = pl.multiple_of(c * i_chunk, _LANE)
            h1 = jnp.dot(enc, w1_ref[:, pl.ds(i0, i_chunk)],
                         preferred_element_type=jnp.float32)   # (tS, i_chunk)
            t = jnp.tanh((h1 + h2_ref[0, :, pl.ds(i0, i_chunk)]).astype(act_dtype))
            return acc + jnp.sum(t * w3_ref[:, pl.ds(i0, i_chunk)], axis=-1)

        score = lax.fori_loop(0, n_chunks, chunk,
                              jnp.zeros((t_s,), jnp.float32), unroll=True)

    # Lane-dense (1, tS) store; scalar bias from SMEM.
    out_ref[0] = (score + b3_ref[0]).reshape(1, t_s).astype(out_ref.dtype)


def prepare_similarity2_params(params, *, matmul_dtype=jnp.bfloat16):
    """One-time weight preparation (hoisted out of the per-call hot path)."""
    w1, b1, w2, b2, w3, b3 = params      # PyTorch shapes: (I,E),(I,),(I,D),(I,),(1,I),(1,)
    I = w1.shape[0]
    I_pad = _round_up(I, _LANE)
    pad_i = I_pad - I
    return {
        # fc1 weight, transposed to (E, I_pad) and cast for the MXU (padded cols are 0).
        "w1t": jnp.pad(jnp.transpose(w1).astype(jnp.float32),
                       ((0, 0), (0, pad_i))).astype(matmul_dtype),
        # fc2 weight (I_pad, D); padded rows are zero so they contribute nothing.
        "w2": jnp.pad(w2.astype(jnp.float32), ((0, pad_i), (0, 0))),
        # Fused hidden biases b1 + b2, padded to I_pad.
        "b12": jnp.pad((b1 + b2).astype(jnp.float32), (0, pad_i)),
        # fc3 weight as a (1, I_pad) row.
        "w3": jnp.pad(w3.astype(jnp.float32), ((0, 0), (0, pad_i))),
        # fc3 bias as an SMEM scalar.
        "b3": b3.astype(jnp.float32).reshape(1),
    }


def _default_act_dtype():
    # bf16 VPU/EUP exists from v6e on; v2-v5 must stay f32 (review guidance).
    try:
        kind = jax.devices()[0].device_kind.lower()
    except Exception:
        return jnp.float32
    if any(f"v{g}" in kind for g in (2, 3, 4, 5)):
        return jnp.float32
    return jnp.bfloat16


def _pick_tiles(B, S, E, I_pad, enc_bytes, act_bytes, max_seq_tile):
    # I chunk: largest multiple of 128 <= _MAX_I_CHUNK that divides I_pad.
    n128 = I_pad // _LANE
    best = 1
    for d in range(1, min(n128, _MAX_I_CHUNK // _LANE) + 1):
        if n128 % d == 0:
            best = d
    i_chunk = best * _LANE
    n_chunks = I_pad // i_chunk

    # Sequence tile from a VMEM budget: W1^T / h2 / w3 (double-buffered) are
    # fixed cost, the rest scales with tS.
    fixed = 2 * E * I_pad * 2 + 2 * I_pad * 4 + 2 * I_pad * 4
    per_row = 2 * E * enc_bytes + i_chunk * (4 + act_bytes) + 2 * 4
    avail = max(_VMEM_BUDGET - fixed, 0)
    cap = max(_LANE, (avail // max(per_row, 1)) // _LANE * _LANE)
    t_s = min(max_seq_tile, cap)

    if S <= t_s:
        t_s = S                                   # single tile, full (unpadded) S dim
        if B == 1 and S > 2 * _LANE:
            # Split so both v7x TensorCores get work (t_s < S, multiple of 128).
            t_s = _round_up(pl.cdiv(S, 2), _LANE)
    num_s = pl.cdiv(S, t_s)                       # partial last block allowed
    return t_s, num_s, i_chunk, n_chunks


def similarity2_pallas(encoder_states, decoder_state, prepared, *,
                       act_dtype=None, max_seq_tile=_MAX_SEQ_TILE):
    """encoder_states: (B, S, E); decoder_state: (B, 1, D) -> (B, S, 1) scores."""
    B, S, E = encoder_states.shape
    w1t, w2, b12, w3, b3 = (prepared["w1t"], prepared["w2"], prepared["b12"],
                            prepared["w3"], prepared["b3"])
    I_pad = w3.shape[1]
    if act_dtype is None:
        act_dtype = _default_act_dtype()

    # fc2 of the single decoder row + fused hidden biases: one tiny XLA matmul,
    # amortized over the whole grid (the kernel never runs an M=1 MXU matmul).
    h2b = jnp.einsum("bod,id->boi",
                     decoder_state.astype(jnp.float32), w2) + b12      # (B, 1, I_pad)

    enc_bytes = encoder_states.dtype.itemsize
    act_bytes = jnp.dtype(act_dtype).itemsize
    t_s, num_s, i_chunk, n_chunks = _pick_tiles(
        B, S, E, I_pad, enc_bytes, act_bytes, max_seq_tile)

    # Explicit scoped-VMEM limit from the actual buffer sizes (+ headroom).
    need = (2 * E * I_pad * 2 + 4 * I_pad * 4      # W1^T, h2, w3 (double-buffered)
            + 2 * t_s * E * enc_bytes              # encoder tile (double-buffered)
            + t_s * i_chunk * (4 + act_bytes)      # h1 / tanh intermediates
            + 2 * t_s * 4)                         # output tile (double-buffered)
    vmem_limit = int(need * 1.5) + (1 << 20)
    vmem_limit = max(vmem_limit, 32 << 20)         # never below the v6e/v7x default
    vmem_limit = min(vmem_limit, 112 << 20)        # stay under physical VMEM

    kernel = functools.partial(_similarity2_kernel, i_chunk=i_chunk,
                               n_chunks=n_chunks, act_dtype=act_dtype)

    out = pl.pallas_call(
        kernel,
        out_shape=jax.ShapeDtypeStruct((B, 1, S), jnp.float32),
        grid_spec=pltpu.PrefetchScalarGridSpec(
            num_scalar_prefetch=0,
            grid=(B, num_s),
            in_specs=[
                # encoder tile: original dtype, full (unpadded) E; cast in-kernel.
                pl.BlockSpec((1, t_s, E), lambda b, s: (b, s, 0)),
                pl.BlockSpec((1, 1, I_pad), lambda b, s: (b, 0, 0)),   # fc2 + biases
                pl.BlockSpec((E, I_pad), lambda b, s: (0, 0)),         # W1^T (bf16)
                pl.BlockSpec((1, I_pad), lambda b, s: (0, 0)),         # w3 row (f32)
                pl.BlockSpec(memory_space=pltpu.MemorySpace.SMEM),     # b3 scalar
            ],
            out_specs=pl.BlockSpec((1, 1, t_s), lambda b, s: (b, 0, s)),
        ),
        compiler_params=pltpu.CompilerParams(
            dimension_semantics=("parallel", "parallel"),
            vmem_limit_bytes=vmem_limit,
        ),
    )(encoder_states, h2b, w1t, w3, b3)

    # lane-dense (B, 1, S) -> (B, S, 1)
    return out[:, 0, :].reshape(B, S, 1).astype(encoder_states.dtype)


def _init_params(key, encoder_dim, decoder_dim, intermediate_dim):
    """Deterministic synthetic parameters, PyTorch nn.Linear weight shapes."""
    ks = jax.random.split(key, 6)

    def u(k, shape, fan_in):
        lim = 1.0 / jnp.sqrt(fan_in)
        return jax.random.uniform(k, shape, jnp.float32, -lim, lim)

    w1 = u(ks[0], (intermediate_dim, encoder_dim), encoder_dim)
    b1 = u(ks[1], (intermediate_dim,), encoder_dim)
    w2 = u(ks[2], (intermediate_dim, decoder_dim), decoder_dim)
    b2 = u(ks[3], (intermediate_dim,), decoder_dim)
    w3 = u(ks[4], (1, intermediate_dim), intermediate_dim)
    b3 = u(ks[5], (1,), intermediate_dim)
    return w1, b1, w2, b2, w3, b3


def _reference(encoder_states, decoder_state, params):
    w1, b1, w2, b2, w3, b3 = params
    h1 = jnp.einsum("bse,ie->bsi", encoder_states, w1) + b1
    h2 = jnp.einsum("bod,id->boi", decoder_state, w2) + b2
    t = jnp.tanh(h1 + h2)
    return jnp.einsum("bsi,oi->bso", t, w3) + b3


if __name__ == "__main__":
    B, S = 2, 8
    encoder_dim, decoder_dim, intermediate_dim = 32, 32, 32

    key = jax.random.PRNGKey(0)
    k_enc, k_dec, k_par = jax.random.split(key, 3)

    encoder_states = jax.random.normal(k_enc, (B, S, encoder_dim), jnp.float32)
    decoder_state = jax.random.normal(k_dec, (B, 1, decoder_dim), jnp.float32)
    params = _init_params(k_par, encoder_dim, decoder_dim, intermediate_dim)

    # One-time weight prep (hoisted out of the hot path), then the jitted kernel call.
    prepared = prepare_similarity2_params(params)
    apply_fn = jax.jit(similarity2_pallas)

    out = jax.block_until_ready(apply_fn(encoder_states, decoder_state, prepared))

    ref = _reference(encoder_states, decoder_state, params)
    assert out.shape == (B, S, 1)
    # bf16 MXU operands (and bf16 tanh on v6e/v7x) with f32 accumulation.
    assert jnp.allclose(out, ref, atol=2e-2, rtol=2e-2), float(jnp.max(jnp.abs(out - ref)))

    print("KERNEL_OK")
</pallas_src>

<mosaic_0001>
module attributes {stable_mosaic.version = 11 : i64} {
  func.func @_similarity2_kernel(%arg0: i32, %arg1: i32, %arg2: memref<1x8x32xf32, #tpu.memory_space<vmem>>, %arg3: memref<1x1x128xf32, #tpu.memory_space<vmem>>, %arg4: memref<32x128xbf16, #tpu.memory_space<vmem>>, %arg5: memref<1x128xf32, #tpu.memory_space<vmem>>, %arg6: memref<1xf32, #tpu.memory_space<smem>>, %arg7: memref<1x1x8xf32, #tpu.memory_space<vmem>>) attributes {dimension_semantics = [#tpu.dimension_semantics<parallel>, #tpu.dimension_semantics<parallel>], iteration_bounds = array<i64: 2, 1>, scalar_prefetch = 0 : i64, scratch_operands = 0 : i64, tpu.core_type = #tpu.core_type<tc>, window_params = [{transform_indices = @transform_0, window_bounds = array<i64: 1, 8, 32>}, {transform_indices = @transform_1, window_bounds = array<i64: 1, 1, 128>}, {pipeline_mode = #tpu.pipeline_mode<synchronous>, transform_indices = @transform_2, window_bounds = array<i64: 32, 128>}, {pipeline_mode = #tpu.pipeline_mode<synchronous>, transform_indices = @transform_3, window_bounds = array<i64: 1, 128>}, {transform_indices = @transform_4, window_bounds = array<i64: 1>}, {transform_indices = @transform_5, window_bounds = array<i64: 1, 1, 8>}]} {
    %c0 = arith.constant 0 : index
    %c0_0 = arith.constant 0 : index
    %c0_1 = arith.constant 0 : index
    %0 = vector.load %arg2[%c0, %c0_0, %c0_1] : memref<1x8x32xf32, #tpu.memory_space<vmem>>, vector<1x8x32xf32>
    %1 = vector.shape_cast %0 : vector<1x8x32xf32> to vector<8x32xf32>
    %2 = arith.truncf %1 : vector<8x32xf32> to vector<8x32xbf16>
    %c0_2 = arith.constant 0 : index
    %c0_3 = arith.constant 0 : index
    %3 = vector.load %arg4[%c0_2, %c0_3] : memref<32x128xbf16, #tpu.memory_space<vmem>>, vector<32x128xbf16>
    %cst = arith.constant dense<0.000000e+00> : vector<8x128xf32>
    %4 = tpu.matmul %2, %3, %cst {dimension_numbers = #tpu.dot_dimension_numbers<[1], [0], [0], [1], [0, 0, 1, 1], [], []>} : vector<8x32xbf16>, vector<32x128xbf16>, vector<8x128xf32> -> vector<8x128xf32>
    %c0_4 = arith.constant 0 : index
    %c0_5 = arith.constant 0 : index
    %c0_6 = arith.constant 0 : index
    %5 = vector.load %arg3[%c0_4, %c0_5, %c0_6] : memref<1x1x128xf32, #tpu.memory_space<vmem>>, vector<1x1x128xf32>
    %6 = vector.shape_cast %5 : vector<1x1x128xf32> to vector<1x128xf32>
    %7 = vector.broadcast %6 : vector<1x128xf32> to vector<8x128xf32>
    %8 = arith.addf %4, %7 : vector<8x128xf32>
    %9 = arith.truncf %8 : vector<8x128xf32> to vector<8x128xbf16>
    %10 = math.tanh %9 : vector<8x128xbf16>
    %c0_7 = arith.constant 0 : index
    %c0_8 = arith.constant 0 : index
    %11 = vector.load %arg5[%c0_7, %c0_8] : memref<1x128xf32, #tpu.memory_space<vmem>>, vector<1x128xf32>
    %12 = arith.extf %10 : vector<8x128xbf16> to vector<8x128xf32>
    %13 = vector.broadcast %11 : vector<1x128xf32> to vector<8x128xf32>
    %14 = arith.mulf %12, %13 : vector<8x128xf32>
    %cst_9 = arith.constant dense<0.000000e+00> : vector<8xf32>
    %15 = vector.multi_reduction <add>, %14, %cst_9 [1] : vector<8x128xf32> to vector<8xf32>
    %c0_10 = arith.constant 0 : index
    %16 = memref.load %arg6[%c0_10] : memref<1xf32, #tpu.memory_space<smem>>
    %17 = vector.broadcast %16 : f32 to vector<8xf32>
    %18 = arith.addf %15, %17 : vector<8xf32>
    %19 = vector.shape_cast %18 : vector<8xf32> to vector<1x8xf32>
    %c0_11 = arith.constant 0 : index
    %c0_12 = arith.constant 0 : index
    %c0_13 = arith.constant 0 : index
    %20 = vector.load %arg7[%c0_11, %c0_12, %c0_13] : memref<1x1x8xf32, #tpu.memory_space<vmem>>, vector<1x1x8xf32>
    %21 = vector.shape_cast %20 : vector<1x1x8xf32> to vector<1x8xf32>
    %22 = vector.shape_cast %19 : vector<1x8xf32> to vector<1x1x8xf32>
    tpu.vector_store %arg7[%c0_11, %c0_12, %c0_13], %22 {strides = array<i32>} : memref<1x1x8xf32, #tpu.memory_space<vmem>>, vector<1x1x8xf32>,
    return
  }
  func.func @transform_0(%arg0: i32, %arg1: i32) -> (i32, i32, i32) {
    %c0_i32 = arith.constant 0 : i32
    %c0_i32_0 = arith.constant 0 : i32
    return %arg0, %arg1, %c0_i32 : i32, i32, i32
  }
  func.func @transform_1(%arg0: i32, %arg1: i32) -> (i32, i32, i32) {
    %c0_i32 = arith.constant 0 : i32
    %c0_i32_0 = arith.constant 0 : i32
    %c0_i32_1 = arith.constant 0 : i32
    return %arg0, %c0_i32, %c0_i32_0 : i32, i32, i32
  }
  func.func @transform_2(%arg0: i32, %arg1: i32) -> (i32, i32) {
    %c0_i32 = arith.constant 0 : i32
    %c0_i32_0 = arith.constant 0 : i32
    %c0_i32_1 = arith.constant 0 : i32
    return %c0_i32, %c0_i32_0 : i32, i32
  }
  func.func @transform_3(%arg0: i32, %arg1: i32) -> (i32, i32) {
    %c0_i32 = arith.constant 0 : i32
    %c0_i32_0 = arith.constant 0 : i32
    %c0_i32_1 = arith.constant 0 : i32
    return %c0_i32, %c0_i32_0 : i32, i32
  }
  func.func @transform_4(%arg0: i32, %arg1: i32) -> i32 {
    %c0_i32 = arith.constant 0 : i32
    %c0_i32_0 = arith.constant 0 : i32
    return %c0_i32 : i32
  }
  func.func @transform_5(%arg0: i32, %arg1: i32) -> (i32, i32, i32) {
    %c0_i32 = arith.constant 0 : i32
    %c0_i32_0 = arith.constant 0 : i32
    return %arg0, %c0_i32, %arg1 : i32, i32, i32
  }
}

</mosaic_0001>

<bundles_post_ra>
// kernel: similarity2_pallas.1
= control target key start
LH: loop header
LB: loop body
LE: loop exit
PB: predicated region body
PF: predicated region fallthrough
CT: control target
= control target key end

     0   :  { %s711_s0 = inlined_call_operand.vmem [shape: f32[2,8,32], index: 0, kind: input, shape index: {}]   ;;  %s712_s1 = inlined_call_operand.vmem [shape: f32[2,1,128], index: 1, kind: input, shape index: {}]   ;;  %s713_s2 = inlined_call_operand.vmem [shape: bf16[32,128], index: 2, kind: input, shape index: {}]   ;;  %s714_s3 = inlined_call_operand.vmem [shape: f32[1,128], index: 3, kind: input, shape index: {}]   ;;  %s715_s4 = inlined_call_operand.<no memory space> [shape: f32[1], index: 4, kind: input, shape index: {}]   ;;  %s716_s5 = inlined_call_operand.hbm [shape: f32[2,1,8], index: 5, kind: output, shape index: {}]  }
   0x1   :  { %10 = sst [smem:[#allocation2]] %s715_s4 }
   0x2   :  { %11 = vsyncpa [#allocation4], 0 }
   0x3   :  { %13 = vsyncpa [#allocation4 + $0x1], 0  ;;  %s602_s20 = smov 0   ;;  %s604_s21 = smov 0  }
   0x4   :  { %s606_s22 = smov 0   ;;  %s608_s23 = smov 0  }
   0x5   :  { %s610_s24 = smov 0   ;;  %s612_s25 = smov 0  }
   0x6 LB: > { %s411_s4 = sadd.s32 4294967295, %s567_s25   ;;  %s412_s26 = sadd.s32 4294967294, %s567_s25   ;;  %s567_s25 = sphi %s612_s25, %s19_s25   ;;  %s563_s24 = sphi %s610_s24, %s723_s24   ;;  %s559_s23 = sphi %s608_s23, %s722_s23   ;;  %s555_s22 = sphi %s606_s22, %s721_s22   ;;  %s551_s21 = sphi %s604_s21, %s720_s21   ;;  %s547_s20 = sphi %s602_s20, %s719_s20  }
   0x7   : > { %s31_s27 = sadd.s32 1, %s563_s24  ;;  %s157_s28 = sadd.s32 1, %s555_s22 }
   0x8   : > { %p33_p0 = scmp.ge.s32.totalorder %s31_s27, 2  ;;  %p167_p1 = scmp.ne.s32.totalorder %s555_s22, %s551_s21 }
   0x9   : > { %p168_p2 = scmp.eq.s32.totalorder %s411_s4, 1  ;;  %p173_p3 = scmp.ne.s32.totalorder %s551_s21, %s547_s20 }
   0xa   : > { %s725_s27 = smov (%p33_p0, %s31_s27), 0  ;;  %p174_p5 = scmp.eq.s32.totalorder %s412_s26, 1 }
   0xb   : > { %p642_p4 = por %p168_p2, %p167_p1  ;;  %s152_s30 = ssub.s32 %s563_s24, %s725_s27 }
   0xc   : > { %p415_p6 = scmp.ge.s32.totalorder %s567_s25, 1  ;;  %p155_p7 = scmp.eq.s32.totalorder %s152_s30, 0 }
   0xd   : > { %p649_p8 = por %p174_p5, %p173_p3  ;;  %p217_p9 = scmp.lt.s32.totalorder %s567_s25, 3 }
   0xe   : > { %s655_s7 = scalar_select %p155_p7, %s555_s22, %s157_s28  }
   0xf   : > { %p218_p10 = pnand %p415_p6, %p217_p9 }
  0x10   : > { %p249_p11 = scmp.lt.s32.totalorder (!%p218_p10), %s559_s23, 1  ;;  %s311_s28 = sld [smem:[#allocation2]] (!%p218_p10) }
  0x11   : > { %221 = sbr.rel (%p218_p10) target bundleno = 298 (0x12a), region = 40  ;;  %s247_s30 = sand.u32 (!%p218_p10), 1, %s551_s21  }
  0x12   : > { %s331_s10 = scalar_lea.hbm (!%p218_p10), %s716_s5, %s559_s23  ;;  %s248_s11 = scalar_lea.vmem (!%p218_p10), [#allocation3], %s247_s30 }
  0x13   : > { %s322_s14 = scalar_lea.sflag (!%p218_p10), [#allocation4], %s247_s30  ;;  %s509_s18 = scalar_lea.hbm (!%p218_p10), %s716_s5, 2 }
  0x16   : > { %v429_v0 = vld [vmem:[%s713_s2 + $0x8] sm:$0xff]  ;;  %v428_v1 = vld [vmem:[%s713_s2] sm:$0xff]  ;;  %s250_s12 = scalar_select %p249_p11, %s559_s23, 1  ;;  %vm282_vm0 = vcmask 261120   ;;  %v315_v15 = vlaneseq  ;;  %v312_v16 = vstv %s311_s28  ;;  %vm319_vm1 = vcmask 57344  }
  0x17   : > { %292 = vmatpush.bf16.msra.mxu0 %v429_v0  ;;  %v486_v12 = vld [vmem:[%s714_s3] ss:$0 sm:$0xff] }
  0x18   : > { %s416_s13 = sshll.u32 %s250_s12, 3  ;;  %s258_s16 = scalar_lea.vmem %s712_s1, %s250_s12  ;;  %v316_v17 = vand.u32 127, %v315_v15 }
  0x19   : > { %s255_s19 = scalar_lea.vmem %s711_s0, %s416_s13  ;;  %v485_v4 = vld [vmem:[%s258_s16] ss:$0 sm:$0xff]  ;;  %s333_s12 = sshll.u32 %s248_s11, 4  ;;  %s334_s12 = int_to_ptr.vmem [resolvable:$true] %s333_s12 }
  0x1a   : > { %v260_v2 = vld [vmem:[%s255_s19] sm:$0xff]  ;;  %s335_s13 = sshll.u32 %s331_s10, 4  ;;  %s336_s13 = int_to_ptr.hbm [resolvable:$true] %s335_s13 }
  0x1b   : > { %293 = vmatpush.bf16.msra.mxu0 %v428_v1  ;;  %v261_v3 = vpack.c.bf16 %v260_v2, %v260_v2  ;;  %s503_s15 = sshra.s32 %s336_s13, 4  ;;  %s504_s15 = int_to_ptr.hbm [resolvable:$true] %s503_s15 }
  0x1c   : > { %s505_s16 = scalar_lea.hbm %s504_s15, 1  ;;  %p510_p1 = scmp.lt.s32.totalorder %s504_s15, %s716_s5 }
  0x1d   : > { %p506_p12 = scmp.ne.s32.totalorder %s504_s15, %s505_s16  ;;  %p511_p2 = scmp.lt.s32.totalorder %s509_s18, %s505_s16 }
  0x1e   : > { %425 = vmatmul.msk.bf16.vlgmr.msra.gmra.mxu0 %vm282_vm0, %v261_v3 }
  0x1f   : > { %p507_p13 = pnand %p506_p12, %p642_p4  ;;  %p512_p3 = por %p511_p2, %p510_p1 }
  0x21   : > { %p508_p0 = pneg %p507_p13 }
  0x23   : > { %p513_p5 = pnand %p512_p3, %p508_p0 }
  0x9b   : > { %v295_v5 = vpop.f32.mrf.mxu0 }
  0x9c   : > { %v296_v6 = vadd.f32 %v485_v4, %v295_v5 }
  0x9e   : > { %v299_v7 = vpack.c.bf16 %v296_v6, %v296_v6 }
  0xa0   : > { %v300_v8 = vunpack.c.l.bf16 %v299_v7 }
  0xa2   : > { %487 = vtanh.f32 %v300_v8 }
  0xa3   : > { %v297_v9 = vpop.f32.mrf.mxu0 }
  0xa8   : > { %v488_v10 = vpop.eup %487 }
  0xa9   : > { %v302_v11 = vpack.c.bf16 %v488_v10, %v488_v10 }
  0xab   : > { %v304_v13 = vunpack.c.l.bf16 %v302_v11 }
  0xad   : > { %v308_v14 = vmul.f32 %v486_v12, %v304_v13 }
  0xaf   : > { %309 = vadd.xlane.f32.xlu0 %v308_v14 }
 0x122   : > { %v310_v18 = vpop.xlane.xlu0 %309 }
 0x123   : > { %v313_v19 = vadd.f32 %v312_v16, %v310_v18 }
 0x125   : > { %v317_v20 = vperm.slane %v313_v19, %v316_v17 }
 0x127   : > { %320 = vst.msk [vmem:[%s248_s11] sm:$0x1] %vm319_vm1, %v317_v20 }
 0x128   : > { %516 = shalt.err (!%p513_p5)
}
 0x129   : > { %430 = dma.vmem_to_hbm [thread:$0]  (%p642_p4), %s334_s12, 16, %s336_s13, %s322_s14  }
 0x12a PF: > { %p436_p6 = scmp.ge.s32.totalorder %s567_s25, 2  ;;  %s347_s26 = sand.u32 1, %s547_s20  }
 0x12b   : > { %s348_s28 = scalar_lea.sflag [#allocation4], %s347_s26 }
 0x12c   : > { %p433_p7 = pnand %p436_p6, %p649_p8 }
 0x12e   : > { %p434_p9 = pneg %p433_p7 }
 0x130   : > { %542 = dma.done.wait (%p434_p9), %s348_s28, 16  }
 0x131   : > { %544 = vsyncadd (%p434_p9), %s348_s28, 4294967280  ;;  %s19_s25 = sadd.s32 1, %s567_s25   ;;  %s719_s20 = smov %s551_s21 }
 0x132   : > { %p16_p10 = scmp.ge.s32.totalorder %s19_s25, 4   ;;  %s720_s21 = smov %s555_s22 }
 0x133   : > { %s721_s22 = smov %s655_s7  ;;  %s722_s23 = smov %s563_s24 }
 0x134   : > { %s723_s24 = smov %s725_s27  ;;  %18 = sbr.rel (!%p16_p10) target bundleno = 6 (0x6), region = 78 }
 0x139   :  { %353 = vsyncpa [#allocation4], 1 }
 0x13a   :  { %355 = vsyncpa [#allocation4 + $0x1], 1 }

</bundles_post_ra>
